<compile_context>
chip_gen: v7x
topology: tpu7x:2x2x1
jax: 0.10.0
libtpu: 0.0.40
codegen_flags: <defaults>
</compile_context>

<pallas_src>
import jax
import jax.numpy as jnp
from jax.experimental import pallas as pl
from jax.experimental.pallas import tpu as pltpu


# --------------------------------------------------------------------------
# Shared in-kernel helper: folded-norm 1x1 conv -> ReLU -> GAP -> linear head
# --------------------------------------------------------------------------
def _backbone_logits(x_ref, wconv_ref, bconv_ref, wfc_ref, bfc_ref, feat_ref):
    # x_ref:    (N, C_in, H*W)    raw pixels f32 (normalization folded into w)
    # wconv:    (F, C_in)         folded conv weight
    # bconv:    (F, 1)            folded conv bias
    # wfc:      (F, num_classes)  pre-transposed FC weight
    # bfc:      (1, num_classes)
    # feat_ref: (N, F)            VMEM scratch, never leaves VMEM
    n = x_ref.shape[0]
    f = feat_ref.shape[1]
    w = wconv_ref[...]
    b = bconv_ref[...]
    for i in range(n):                         # static unroll over the small batch
        xi = x_ref[i]                          # (C_in, HW) -- lane-dense last dim
        pre = jnp.dot(w, xi, preferred_element_type=jnp.float32) + b   # (F, HW)
        act = jnp.maximum(pre, 0.0)            # ReLU
        feat_ref[pl.ds(i, 1), :] = jnp.mean(act, axis=-1).reshape(1, f)
    logits = (
        jnp.dot(feat_ref[...], wfc_ref[...], preferred_element_type=jnp.float32)
        + bfc_ref[...]
    )
    return logits


# --------------------------------------------------------------------------
# Fused kernels
# --------------------------------------------------------------------------
def _eval_kernel(x_ref, wconv_ref, bconv_ref, wfc_ref, bfc_ref, logits_ref, feat_ref):
    logits_ref[...] = _backbone_logits(
        x_ref, wconv_ref, bconv_ref, wfc_ref, bfc_ref, feat_ref
    )


def _train_kernel(x_ref, wconv_ref, bconv_ref, wfc_ref, bfc_ref, labels_ref,
                  logits_ref, loss_ref, acc1_ref, acc5_ref, feat_ref):
    logits = _backbone_logits(x_ref, wconv_ref, bconv_ref, wfc_ref, bfc_ref, feat_ref)
    logits_ref[...] = logits

    n, c = logits.shape
    labels = labels_ref[...]                                       # (N, 1) int32

    # CrossEntropyLoss (mean reduction), max-subtracted softmax.
    row_max = jnp.max(logits, axis=-1, keepdims=True)
    lse = jnp.log(jnp.sum(jnp.exp(logits - row_max), axis=-1, keepdims=True)) + row_max

    class_ids = jax.lax.broadcasted_iota(jnp.int32, (n, c), 1)
    one_hot = class_ids == labels                                  # (N, C)
    tgt = jnp.sum(jnp.where(one_hot, logits, 0.0), axis=-1, keepdims=True)

    loss = jnp.mean(lse - tgt)

    # rank of the target logit = #logits strictly greater than it.
    # TODO(synk): torch.topk's index-based tie-breaking is not reproduced; this
    #             matches it whenever logits have no exact ties.
    rank = jnp.sum((logits > tgt).astype(jnp.float32), axis=-1, keepdims=True)
    acc1 = 100.0 * jnp.mean((rank < 1.0).astype(jnp.float32))
    acc5 = 100.0 * jnp.mean((rank < 5.0).astype(jnp.float32))

    loss_ref[...] = loss.reshape(1, 1)
    acc1_ref[...] = acc1.reshape(1, 1)
    acc5_ref[...] = acc5.reshape(1, 1)


# --------------------------------------------------------------------------
# Wrapper (the "Classification.forward" equivalent)
# --------------------------------------------------------------------------
def _prep_params(params):
    """Fold (x/255 - mean)/std into the 1x1 conv; pre-transpose the FC weight."""
    mean = params["pixel_mean"].astype(jnp.float32)                # (C_in,)
    std = params["pixel_std"].astype(jnp.float32)                  # (C_in,)
    w_conv = params["w_conv"].astype(jnp.float32)                  # (F, C_in)
    f = w_conv.shape[0]
    num_classes = params["w_fc"].shape[0]

    w_fold = w_conv / (255.0 * std)[None, :]                       # (F, C_in)
    b_fold = (params["b_conv"].astype(jnp.float32)
              - w_conv @ (mean / std)).reshape(f, 1)               # (F, 1)
    wfc_t = params["w_fc"].astype(jnp.float32).T                   # (F, num_classes)
    b_fc = params["b_fc"].astype(jnp.float32).reshape(1, num_classes)
    return w_fold, b_fold, wfc_t, b_fc


def classification_forward(x, labels, params, training=True):
    n, c_in, h, w_sp = x.shape
    hw = h * w_sp
    f = params["w_conv"].shape[0]
    num_classes = params["w_fc"].shape[0]

    w_fold, b_fold, wfc_t, b_fc = _prep_params(params)

    # Lane-dense image layout (pure reshape, no data movement): last dim = H*W.
    x3 = x.astype(jnp.float32).reshape(n, c_in, hw)

    common_in_specs = [
        pl.BlockSpec((n, c_in, hw), lambda i: (0, 0, 0)),
        pl.BlockSpec((f, c_in), lambda i: (0, 0)),
        pl.BlockSpec((f, 1), lambda i: (0, 0)),
        pl.BlockSpec((f, num_classes), lambda i: (0, 0)),
        pl.BlockSpec((1, num_classes), lambda i: (0, 0)),
    ]
    scratch = [pltpu.VMEM((n, f), jnp.float32)]
    cparams = pltpu.CompilerParams(dimension_semantics=("arbitrary",))

    if not training:
        return pl.pallas_call(
            _eval_kernel,
            out_shape=jax.ShapeDtypeStruct((n, num_classes), jnp.float32),
            grid=(1,),
            in_specs=common_in_specs,
            out_specs=pl.BlockSpec((n, num_classes), lambda i: (0, 0)),
            scratch_shapes=scratch,
            compiler_params=cparams,
        )(x3, w_fold, b_fold, wfc_t, b_fc)

    labels2d = labels.astype(jnp.int32).reshape(n, 1)
    logits, loss, acc1, acc5 = pl.pallas_call(
        _train_kernel,
        out_shape=(
            jax.ShapeDtypeStruct((n, num_classes), jnp.float32),
            jax.ShapeDtypeStruct((1, 1), jnp.float32),
            jax.ShapeDtypeStruct((1, 1), jnp.float32),
            jax.ShapeDtypeStruct((1, 1), jnp.float32),
        ),
        grid=(1,),
        in_specs=common_in_specs + [pl.BlockSpec((n, 1), lambda i: (0, 0))],
        out_specs=(
            pl.BlockSpec((n, num_classes), lambda i: (0, 0)),
            pl.BlockSpec((1, 1), lambda i: (0, 0)),
            pl.BlockSpec((1, 1), lambda i: (0, 0)),
            pl.BlockSpec((1, 1), lambda i: (0, 0)),
        ),
        scratch_shapes=scratch,
        compiler_params=cparams,
    )(x3, w_fold, b_fold, wfc_t, b_fc, labels2d)

    return {
        "loss_cls": loss[0, 0],
        "Acc@1": acc1.reshape(1),   # matches torch accuracy() shape (1,)
        "Acc@5": acc5.reshape(1),
        "preds": logits,
    }


# --------------------------------------------------------------------------
# Pure-JAX reference for correctness check (unfolded math)
# --------------------------------------------------------------------------
def _reference(x, labels, params):
    xn = (x.astype(jnp.float32) / 255.0 - params["pixel_mean"].reshape(1, 3, 1, 1)) \
         / params["pixel_std"].reshape(1, 3, 1, 1)
    pre = jnp.einsum("nchw,fc->nfhw", xn, params["w_conv"]) \
        + params["b_conv"].reshape(1, -1, 1, 1)
    feat = jnp.maximum(pre, 0.0).mean(axis=(2, 3))
    logits = feat @ params["w_fc"].T + params["b_fc"]
    lse = jax.scipy.special.logsumexp(logits, axis=-1)
    tgt = jnp.take_along_axis(logits, labels[:, None], axis=-1)[:, 0]
    loss = jnp.mean(lse - tgt)
    rank = jnp.sum(logits > tgt[:, None], axis=-1)
    acc1 = 100.0 * jnp.mean((rank < 1).astype(jnp.float32))
    acc5 = 100.0 * jnp.mean((rank < 5).astype(jnp.float32))
    return logits, loss, acc1, acc5


if __name__ == "__main__":
    key = jax.random.PRNGKey(0)
    k_x, k_lab, k_wc, k_bc, k_wf, k_bf = jax.random.split(key, 6)

    N, C_IN, H, W = 2, 3, 16, 16
    F, NUM_CLASSES = 32, 10

    # deterministic synthetic inputs / parameters
    x = jnp.round(jax.random.uniform(k_x, (N, C_IN, H, W), minval=0.0, maxval=255.0))
    labels = jax.random.randint(k_lab, (N,), 0, NUM_CLASSES, dtype=jnp.int32)

    params = {
        "pixel_mean": jnp.array([0.485, 0.456, 0.406], jnp.float32),
        "pixel_std": jnp.array([0.229, 0.224, 0.225], jnp.float32),
        "w_conv": 0.1 * jax.random.normal(k_wc, (F, C_IN), jnp.float32),
        "b_conv": 0.1 * jax.random.normal(k_bc, (F,), jnp.float32),
        "w_fc": 0.1 * jax.random.normal(k_wf, (NUM_CLASSES, F), jnp.float32),
        "b_fc": 0.1 * jax.random.normal(k_bf, (NUM_CLASSES,), jnp.float32),
    }

    out = classification_forward(x, labels, params, training=True)
    jax.block_until_ready(out)

    preds_eval = classification_forward(x, labels, params, training=False)
    jax.block_until_ready(preds_eval)

    ref_logits, ref_loss, ref_acc1, ref_acc5 = _reference(x, labels, params)
    assert jnp.allclose(out["preds"], ref_logits, atol=1e-4, rtol=1e-4)
    assert jnp.allclose(preds_eval, ref_logits, atol=1e-4, rtol=1e-4)
    assert jnp.allclose(out["loss_cls"], ref_loss, atol=1e-4, rtol=1e-4)
    assert jnp.allclose(out["Acc@1"][0], ref_acc1)
    assert jnp.allclose(out["Acc@5"][0], ref_acc5)

    print("KERNEL_OK")
</pallas_src>

<mosaic_0001>
module attributes {stable_mosaic.version = 11 : i64} {
  func.func @_train_kernel(%arg0: i32, %arg1: memref<2x3x256xf32, #tpu.memory_space<vmem>>, %arg2: memref<32x3xf32, #tpu.memory_space<vmem>>, %arg3: memref<32x1xf32, #tpu.memory_space<vmem>>, %arg4: memref<32x10xf32, #tpu.memory_space<vmem>>, %arg5: memref<1x10xf32, #tpu.memory_space<vmem>>, %arg6: memref<2x1xi32, #tpu.memory_space<vmem>>, %arg7: memref<2x10xf32, #tpu.memory_space<vmem>>, %arg8: memref<1x1xf32, #tpu.memory_space<vmem>>, %arg9: memref<1x1xf32, #tpu.memory_space<vmem>>, %arg10: memref<1x1xf32, #tpu.memory_space<vmem>>, %arg11: memref<2x32xf32, #tpu.memory_space<vmem>>) attributes {dimension_semantics = [#tpu.dimension_semantics<arbitrary>], iteration_bounds = array<i64: 1>, scalar_prefetch = 0 : i64, scratch_operands = 1 : i64, tpu.core_type = #tpu.core_type<tc>, window_params = [{pipeline_mode = #tpu.pipeline_mode<synchronous>, transform_indices = @transform_0, window_bounds = array<i64: 2, 3, 256>}, {pipeline_mode = #tpu.pipeline_mode<synchronous>, transform_indices = @transform_1, window_bounds = array<i64: 32, 3>}, {pipeline_mode = #tpu.pipeline_mode<synchronous>, transform_indices = @transform_2, window_bounds = array<i64: 32, 1>}, {pipeline_mode = #tpu.pipeline_mode<synchronous>, transform_indices = @transform_3, window_bounds = array<i64: 32, 10>}, {pipeline_mode = #tpu.pipeline_mode<synchronous>, transform_indices = @transform_4, window_bounds = array<i64: 1, 10>}, {pipeline_mode = #tpu.pipeline_mode<synchronous>, transform_indices = @transform_5, window_bounds = array<i64: 2, 1>}, {pipeline_mode = #tpu.pipeline_mode<synchronous>, transform_indices = @transform_6, window_bounds = array<i64: 2, 10>}, {pipeline_mode = #tpu.pipeline_mode<synchronous>, transform_indices = @transform_7, window_bounds = array<i64: 1, 1>}, {pipeline_mode = #tpu.pipeline_mode<synchronous>, transform_indices = @transform_8, window_bounds = array<i64: 1, 1>}, {pipeline_mode = #tpu.pipeline_mode<synchronous>, transform_indices = @transform_9, window_bounds = array<i64: 1, 1>}]} {
    %c0 = arith.constant 0 : index
    %c0_0 = arith.constant 0 : index
    %0 = vector.load %arg2[%c0, %c0_0] : memref<32x3xf32, #tpu.memory_space<vmem>>, vector<32x3xf32>
    %c0_1 = arith.constant 0 : index
    %c0_2 = arith.constant 0 : index
    %1 = vector.load %arg3[%c0_1, %c0_2] : memref<32x1xf32, #tpu.memory_space<vmem>>, vector<32x1xf32>
    %c0_3 = arith.constant 0 : index
    %c0_4 = arith.constant 0 : index
    %c0_5 = arith.constant 0 : index
    %2 = vector.load %arg1[%c0_3, %c0_4, %c0_5] : memref<2x3x256xf32, #tpu.memory_space<vmem>>, vector<1x3x256xf32>
    %3 = vector.shape_cast %2 : vector<1x3x256xf32> to vector<3x256xf32>
    %cst = arith.constant dense<0.000000e+00> : vector<32x256xf32>
    %4 = tpu.matmul %0, %3, %cst {dimension_numbers = #tpu.dot_dimension_numbers<[1], [0], [0], [1], [0, 0, 1, 1], [], []>} : vector<32x3xf32>, vector<3x256xf32>, vector<32x256xf32> -> vector<32x256xf32>
    %5 = vector.broadcast %1 : vector<32x1xf32> to vector<32x256xf32>
    %6 = arith.addf %4, %5 : vector<32x256xf32>
    %cst_6 = arith.constant 0.000000e+00 : f32
    %7 = vector.broadcast %cst_6 : f32 to vector<32x256xf32>
    %8 = arith.maximumf %6, %7 : vector<32x256xf32>
    %cst_7 = arith.constant dense<0.000000e+00> : vector<32xf32>
    %9 = vector.multi_reduction <add>, %8, %cst_7 [1] : vector<32x256xf32> to vector<32xf32>
    %cst_8 = arith.constant 2.560000e+02 : f32
    %10 = vector.broadcast %cst_8 : f32 to vector<32xf32>
    %11 = arith.divf %9, %10 : vector<32xf32>
    %12 = vector.shape_cast %11 : vector<32xf32> to vector<1x32xf32>
    %c0_9 = arith.constant 0 : index
    %c0_10 = arith.constant 0 : index
    %13 = vector.load %arg11[%c0_9, %c0_10] : memref<2x32xf32, #tpu.memory_space<vmem>>, vector<1x32xf32>
    tpu.vector_store %arg11[%c0_9, %c0_10], %12 {strides = array<i32>} : memref<2x32xf32, #tpu.memory_space<vmem>>, vector<1x32xf32>,
    %c1 = arith.constant 1 : index
    %c0_11 = arith.constant 0 : index
    %c0_12 = arith.constant 0 : index
    %14 = vector.load %arg1[%c1, %c0_11, %c0_12] : memref<2x3x256xf32, #tpu.memory_space<vmem>>, vector<1x3x256xf32>
    %15 = vector.shape_cast %14 : vector<1x3x256xf32> to vector<3x256xf32>
    %cst_13 = arith.constant dense<0.000000e+00> : vector<32x256xf32>
    %16 = tpu.matmul %0, %15, %cst_13 {dimension_numbers = #tpu.dot_dimension_numbers<[1], [0], [0], [1], [0, 0, 1, 1], [], []>} : vector<32x3xf32>, vector<3x256xf32>, vector<32x256xf32> -> vector<32x256xf32>
    %17 = vector.broadcast %1 : vector<32x1xf32> to vector<32x256xf32>
    %18 = arith.addf %16, %17 : vector<32x256xf32>
    %cst_14 = arith.constant 0.000000e+00 : f32
    %19 = vector.broadcast %cst_14 : f32 to vector<32x256xf32>
    %20 = arith.maximumf %18, %19 : vector<32x256xf32>
    %cst_15 = arith.constant dense<0.000000e+00> : vector<32xf32>
    %21 = vector.multi_reduction <add>, %20, %cst_15 [1] : vector<32x256xf32> to vector<32xf32>
    %cst_16 = arith.constant 2.560000e+02 : f32
    %22 = vector.broadcast %cst_16 : f32 to vector<32xf32>
    %23 = arith.divf %21, %22 : vector<32xf32>
    %24 = vector.shape_cast %23 : vector<32xf32> to vector<1x32xf32>
    %c1_17 = arith.constant 1 : index
    %c0_18 = arith.constant 0 : index
    %25 = vector.load %arg11[%c1_17, %c0_18] : memref<2x32xf32, #tpu.memory_space<vmem>>, vector<1x32xf32>
    tpu.vector_store %arg11[%c1_17, %c0_18], %24 {strides = array<i32>} : memref<2x32xf32, #tpu.memory_space<vmem>>, vector<1x32xf32>,
    %c0_19 = arith.constant 0 : index
    %c0_20 = arith.constant 0 : index
    %26 = vector.load %arg11[%c0_19, %c0_20] : memref<2x32xf32, #tpu.memory_space<vmem>>, vector<2x32xf32>
    %c0_21 = arith.constant 0 : index
    %c0_22 = arith.constant 0 : index
    %27 = vector.load %arg4[%c0_21, %c0_22] : memref<32x10xf32, #tpu.memory_space<vmem>>, vector<32x10xf32>
    %cst_23 = arith.constant dense<0.000000e+00> : vector<2x10xf32>
    %28 = tpu.matmul %26, %27, %cst_23 {dimension_numbers = #tpu.dot_dimension_numbers<[1], [0], [0], [1], [0, 0, 1, 1], [], []>} : vector<2x32xf32>, vector<32x10xf32>, vector<2x10xf32> -> vector<2x10xf32>
    %c0_24 = arith.constant 0 : index
    %c0_25 = arith.constant 0 : index
    %29 = vector.load %arg5[%c0_24, %c0_25] : memref<1x10xf32, #tpu.memory_space<vmem>>, vector<1x10xf32>
    %30 = vector.broadcast %29 : vector<1x10xf32> to vector<2x10xf32>
    %31 = arith.addf %28, %30 : vector<2x10xf32>
    %c0_26 = arith.constant 0 : index
    %c0_27 = arith.constant 0 : index
    %32 = vector.load %arg7[%c0_26, %c0_27] : memref<2x10xf32, #tpu.memory_space<vmem>>, vector<2x10xf32>
    tpu.vector_store %arg7[%c0_26, %c0_27], %31 {strides = array<i32>} : memref<2x10xf32, #tpu.memory_space<vmem>>, vector<2x10xf32>,
    %c0_28 = arith.constant 0 : index
    %c0_29 = arith.constant 0 : index
    %33 = vector.load %arg6[%c0_28, %c0_29] : memref<2x1xi32, #tpu.memory_space<vmem>>, vector<2x1xi32>
    %cst_30 = arith.constant dense<0xFF800000> : vector<2xf32>
    %34 = vector.multi_reduction <maximumf>, %31, %cst_30 [1] : vector<2x10xf32> to vector<2xf32>
    %35 = vector.shape_cast %34 : vector<2xf32> to vector<2x1xf32>
    %36 = vector.broadcast %35 : vector<2x1xf32> to vector<2x10xf32>
    %37 = arith.subf %31, %36 : vector<2x10xf32>
    %38 = math.exp %37 : vector<2x10xf32>
    %cst_31 = arith.constant dense<0.000000e+00> : vector<2xf32>
    %39 = vector.multi_reduction <add>, %38, %cst_31 [1] : vector<2x10xf32> to vector<2xf32>
    %40 = vector.shape_cast %39 : vector<2xf32> to vector<2x1xf32>
    %41 = math.log %40 : vector<2x1xf32>
    %42 = arith.addf %41, %35 : vector<2x1xf32>
    %43 = tpu.iota {dimensions = array<i32: 1>} : vector<2x10xi32>
    %44 = vector.broadcast %33 : vector<2x1xi32> to vector<2x10xi32>
    %45 = arith.cmpi eq, %43, %44 : vector<2x10xi32>
    %cst_32 = arith.constant 0.000000e+00 : f32
    %46 = vector.broadcast %cst_32 : f32 to vector<2x10xf32>
    %47 = arith.select %45, %31, %46 : vector<2x10xi1>, vector<2x10xf32>
    %cst_33 = arith.constant dense<0.000000e+00> : vector<2xf32>
    %48 = vector.multi_reduction <add>, %47, %cst_33 [1] : vector<2x10xf32> to vector<2xf32>
    %49 = vector.shape_cast %48 : vector<2xf32> to vector<2x1xf32>
    %50 = arith.subf %42, %49 : vector<2x1xf32>
    %51 = vector.shape_cast %50 : vector<2x1xf32> to vector<1x2x1xf32>
    %cst_34 = arith.constant dense<0.000000e+00> : vector<1xf32>
    %52 = vector.multi_reduction <add>, %51, %cst_34 [1, 2] : vector<1x2x1xf32> to vector<1xf32>
    %53 = vector.shape_cast %52 : vector<1xf32> to vector<1x1x1xf32>
    %54 = vector.extract %53[0, 0, 0] : f32 from vector<1x1x1xf32>
    %cst_35 = arith.constant 2.000000e+00 : f32
    %55 = arith.divf %54, %cst_35 : f32
    %56 = vector.broadcast %49 : vector<2x1xf32> to vector<2x10xf32>
    %57 = arith.cmpf ogt, %31, %56 : vector<2x10xf32>
    %58 = arith.extui %57 : vector<2x10xi1> to vector<2x10xi32>
    %59 = arith.sitofp %58 : vector<2x10xi32> to vector<2x10xf32>
    %cst_36 = arith.constant dense<0.000000e+00> : vector<2xf32>
    %60 = vector.multi_reduction <add>, %59, %cst_36 [1] : vector<2x10xf32> to vector<2xf32>
    %61 = vector.shape_cast %60 : vector<2xf32> to vector<2x1xf32>
    %cst_37 = arith.constant 1.000000e+00 : f32
    %62 = vector.broadcast %cst_37 : f32 to vector<2x1xf32>
    %63 = arith.cmpf olt, %61, %62 : vector<2x1xf32>
    %64 = arith.extui %63 : vector<2x1xi1> to vector<2x1xi32>
    %65 = arith.sitofp %64 : vector<2x1xi32> to vector<2x1xf32>
    %66 = vector.shape_cast %65 : vector<2x1xf32> to vector<1x2x1xf32>
    %cst_38 = arith.constant dense<0.000000e+00> : vector<1xf32>
    %67 = vector.multi_reduction <add>, %66, %cst_38 [1, 2] : vector<1x2x1xf32> to vector<1xf32>
    %68 = vector.shape_cast %67 : vector<1xf32> to vector<1x1x1xf32>
    %69 = vector.extract %68[0, 0, 0] : f32 from vector<1x1x1xf32>
    %cst_39 = arith.constant 2.000000e+00 : f32
    %70 = arith.divf %69, %cst_39 : f32
    %cst_40 = arith.constant 1.000000e+02 : f32
    %71 = arith.mulf %cst_40, %70 : f32
    %cst_41 = arith.constant 5.000000e+00 : f32
    %72 = vector.broadcast %cst_41 : f32 to vector<2x1xf32>
    %73 = arith.cmpf olt, %61, %72 : vector<2x1xf32>
    %74 = arith.extui %73 : vector<2x1xi1> to vector<2x1xi32>
    %75 = arith.sitofp %74 : vector<2x1xi32> to vector<2x1xf32>
    %76 = vector.shape_cast %75 : vector<2x1xf32> to vector<1x2x1xf32>
    %cst_42 = arith.constant dense<0.000000e+00> : vector<1xf32>
    %77 = vector.multi_reduction <add>, %76, %cst_42 [1, 2] : vector<1x2x1xf32> to vector<1xf32>
    %78 = vector.shape_cast %77 : vector<1xf32> to vector<1x1x1xf32>
    %79 = vector.extract %78[0, 0, 0] : f32 from vector<1x1x1xf32>
    %cst_43 = arith.constant 2.000000e+00 : f32
    %80 = arith.divf %79, %cst_43 : f32
    %cst_44 = arith.constant 1.000000e+02 : f32
    %81 = arith.mulf %cst_44, %80 : f32
    %82 = vector.broadcast %55 : f32 to vector<1x1xf32>
    %c0_45 = arith.constant 0 : index
    %c0_46 = arith.constant 0 : index
    %83 = vector.load %arg8[%c0_45, %c0_46] : memref<1x1xf32, #tpu.memory_space<vmem>>, vector<1x1xf32>
    tpu.vector_store %arg8[%c0_45, %c0_46], %82 {strides = array<i32>} : memref<1x1xf32, #tpu.memory_space<vmem>>, vector<1x1xf32>,
    %84 = vector.broadcast %71 : f32 to vector<1x1xf32>
    %c0_47 = arith.constant 0 : index
    %c0_48 = arith.constant 0 : index
    %85 = vector.load %arg9[%c0_47, %c0_48] : memref<1x1xf32, #tpu.memory_space<vmem>>, vector<1x1xf32>
    tpu.vector_store %arg9[%c0_47, %c0_48], %84 {strides = array<i32>} : memref<1x1xf32, #tpu.memory_space<vmem>>, vector<1x1xf32>,
    %86 = vector.broadcast %81 : f32 to vector<1x1xf32>
    %c0_49 = arith.constant 0 : index
    %c0_50 = arith.constant 0 : index
    %87 = vector.load %arg10[%c0_49, %c0_50] : memref<1x1xf32, #tpu.memory_space<vmem>>, vector<1x1xf32>
    tpu.vector_store %arg10[%c0_49, %c0_50], %86 {strides = array<i32>} : memref<1x1xf32, #tpu.memory_space<vmem>>, vector<1x1xf32>,
    return
  }
  func.func @transform_0(%arg0: i32) -> (i32, i32, i32) {
    %c0_i32 = arith.constant 0 : i32
    %c0_i32_0 = arith.constant 0 : i32
    %c0_i32_1 = arith.constant 0 : i32
    %c0_i32_2 = arith.constant 0 : i32
    return %c0_i32, %c0_i32_0, %c0_i32_1 : i32, i32, i32
  }
  func.func @transform_1(%arg0: i32) -> (i32, i32) {
    %c0_i32 = arith.constant 0 : i32
    %c0_i32_0 = arith.constant 0 : i32
    %c0_i32_1 = arith.constant 0 : i32
    return %c0_i32, %c0_i32_0 : i32, i32
  }
  func.func @transform_2(%arg0: i32) -> (i32, i32) {
    %c0_i32 = arith.constant 0 : i32
    %c0_i32_0 = arith.constant 0 : i32
    %c0_i32_1 = arith.constant 0 : i32
    return %c0_i32, %c0_i32_0 : i32, i32
  }
  func.func @transform_3(%arg0: i32) -> (i32, i32) {
    %c0_i32 = arith.constant 0 : i32
    %c0_i32_0 = arith.constant 0 : i32
    %c0_i32_1 = arith.constant 0 : i32
    return %c0_i32, %c0_i32_0 : i32, i32
  }
  func.func @transform_4(%arg0: i32) -> (i32, i32) {
    %c0_i32 = arith.constant 0 : i32
    %c0_i32_0 = arith.constant 0 : i32
    %c0_i32_1 = arith.constant 0 : i32
    return %c0_i32, %c0_i32_0 : i32, i32
  }
  func.func @transform_5(%arg0: i32) -> (i32, i32) {
    %c0_i32 = arith.constant 0 : i32
    %c0_i32_0 = arith.constant 0 : i32
    %c0_i32_1 = arith.constant 0 : i32
    return %c0_i32, %c0_i32_0 : i32, i32
  }
  func.func @transform_6(%arg0: i32) -> (i32, i32) {
    %c0_i32 = arith.constant 0 : i32
    %c0_i32_0 = arith.constant 0 : i32
    %c0_i32_1 = arith.constant 0 : i32
    return %c0_i32, %c0_i32_0 : i32, i32
  }
  func.func @transform_7(%arg0: i32) -> (i32, i32) {
    %c0_i32 = arith.constant 0 : i32
    %c0_i32_0 = arith.constant 0 : i32
    %c0_i32_1 = arith.constant 0 : i32
    return %c0_i32, %c0_i32_0 : i32, i32
  }
  func.func @transform_8(%arg0: i32) -> (i32, i32) {
    %c0_i32 = arith.constant 0 : i32
    %c0_i32_0 = arith.constant 0 : i32
    %c0_i32_1 = arith.constant 0 : i32
    return %c0_i32, %c0_i32_0 : i32, i32
  }
  func.func @transform_9(%arg0: i32) -> (i32, i32) {
    %c0_i32 = arith.constant 0 : i32
    %c0_i32_0 = arith.constant 0 : i32
    %c0_i32_1 = arith.constant 0 : i32
    return %c0_i32, %c0_i32_0 : i32, i32
  }
}

</mosaic_0001>

<bundles_post_ra>
// kernel: tpu_custom_call.1
= control target key start
LH: loop header
LB: loop body
LE: loop exit
PB: predicated region body
PF: predicated region fallthrough
CT: control target
= control target key end

     0   :  { %15 = vsyncpa [#allocation4], 0  ;;  %s961_s0 = inlined_call_operand.vmem [shape: f32[2,3,256], index: 0, kind: input, shape index: {}]   ;;  %s962_s1 = inlined_call_operand.vmem [shape: f32[32,3], index: 1, kind: input, shape index: {}]   ;;  %s963_s2 = inlined_call_operand.vmem [shape: f32[32,1], index: 2, kind: input, shape index: {}]   ;;  %s964_s3 = inlined_call_operand.vmem [shape: f32[32,10], index: 3, kind: input, shape index: {}]   ;;  %s965_s4 = inlined_call_operand.vmem [shape: f32[1,10], index: 4, kind: input, shape index: {}]   ;;  %s966_s5 = inlined_call_operand.vmem [shape: s32[2,1], index: 5, kind: input, shape index: {}]   ;;  %s967_s6 = inlined_call_operand.hbm [shape: f32[2,10], index: 6, kind: output, shape index: {0}]   ;;  %s968_s7 = inlined_call_operand.hbm [shape: f32[1,1], index: 7, kind: output, shape index: {1}]   ;;  %s969_s8 = inlined_call_operand.hbm [shape: f32[1,1], index: 8, kind: output, shape index: {2}]   ;;  %s970_s9 = inlined_call_operand.hbm [shape: f32[1,1], index: 9, kind: output, shape index: {3}]  }
   0x1   :  { %16 = vsyncpa [#allocation6], 0  ;;  %v38_v0 = vld [vmem:[%s961_s0] sm:$0x77]  ;;  %vm74_vm0 = vcmask 1042432   ;;  %v755_v4 = vmov 0.0  }
   0x2   :  { %v605_v1 = vld [vmem:[%s961_s0 + $0x8] sm:$0x77]  ;;  %v60_v2 = vcombine.high %v38_v0, %v38_v0  ;;  %143 = vmatprep.mubr.f32.mxu0 %v755_v4  ;;  %299 = vmatprep.mubr.f32.mxu1 %v755_v4  ;;  %v30_v5 = vld [vmem:[%s962_s1] sm:$0xff]  ;;  %vm61_vm1 = vcmask 23552   ;;  %v756_v6 = vmov 0  }
   0x3   :  { %v230_v3 = vcombine.high %v605_v1, %v605_v1  ;;  %653 = vset.pattern.permute.xlu0 %v756_v6  ;;  %654 = vset.pattern.permute.xlu1 %v756_v6 }
   0x4   :  { %599 = vmatprep.subr.msk.mxu0 %vm74_vm0, %v60_v2 }
   0x5   :  { %606 = vmatprep.subr.msk.mxu1 %vm74_vm0, %v230_v3 }
   0x6   :  { %17 = vsyncpa [#allocation9], 0  ;;  %600 = vmatpush1.msk.msra.mxu0 %vm74_vm0, %v38_v0  ;;  %607 = vmatpush1.msk.msra.mxu1 %vm74_vm0, %v605_v1  ;;  %v34_v7 = vld [vmem:[%s963_s2] sm:$0xff]  ;;  %v36_v8 = vld [vmem:[%s963_s2 + $0x10] sm:$0xff]  ;;  %vm758_vm2 = vmmov 0   ;;  %vm208_vm3 = vcmask 130112  }
   0x7   :  { %601 = vmatmul.mubr.msk.f32.vlgmr.msra.gmra.mrb[0].mxu0 %vm61_vm1, %v30_v5  ;;  %608 = vmatmul.mubr.msk.f32.vlgmr.msra.gmra.mrb[0].mxu1 %vm61_vm1, %v30_v5  ;;  %v31_v9 = vld [vmem:[%s962_s1 + $0x8] sm:$0xff]  ;;  %v37_v11 = vld [vmem:[%s963_s2 + $0x18] sm:$0xff]  ;;  %v32_v12 = vld [vmem:[%s962_s1 + $0x10] sm:$0xff]  ;;  %vm215_vm4 = vcmask 195712   ;;  %vm222_vm5 = vcmask 261312   ;;  %vm225_vm6 = vcmask 253952  }
   0x8   :  { %149 = vmatprep.mubr.f32.mxu0 %v755_v4  ;;  %305 = vmatprep.mubr.f32.mxu1 %v755_v4  ;;  %v35_v10 = vld [vmem:[%s963_s2 + $0x8] sm:$0xff]  ;;  %v33_v13 = vld [vmem:[%s962_s1 + $0x18] sm:$0xff]  ;;  %vm385_vm7 = vcmask 261120   ;;  %vm459_vm8 = vcmask 74752   ;;  %vm483_vm11 = vcmask 1024  }
   0x9   :  { %41 = vperm.xlu0 %653, %v34_v7   ;;  %51 = vperm.xlu1 %654, %v36_v8  }
   0xb   :  { %602 = vmatmul.mubr.msk.f32.gmra.mrb[2].mxu0 %vm61_vm1, %v31_v9  ;;  %609 = vmatmul.mubr.msk.f32.gmra.mrb[2].mxu1 %vm61_vm1, %v31_v9 }
   0xc   :  { %155 = vmatprep.mubr.f32.mxu0 %v755_v4  ;;  %311 = vmatprep.mubr.f32.mxu1 %v755_v4 }
   0xd   :  { %46 = vperm.xlu0 %653, %v35_v10   ;;  %56 = vperm.xlu1 %654, %v37_v11   ;;  %v461_v11 = vld [vmem:[%s966_s5] sm:$0x3] }
   0xf   :  { %603 = vmatmul.mubr.msk.f32.gmra.mrb[4].mxu0 %vm61_vm1, %v32_v12  ;;  %610 = vmatmul.mubr.msk.f32.gmra.mrb[4].mxu1 %vm61_vm1, %v32_v12  ;;  %v374_v12 = vld [vmem:[%s964_s3] sm:$0xff] }
  0x10   :  { %161 = vmatprep.mubr.f32.mxu0 %v755_v4  ;;  %317 = vmatprep.mubr.f32.mxu1 %v755_v4 }
  0x13   :  { %604 = vmatmul.mubr.msk.f32.gmra.mrb[6].mxu0 %vm61_vm1, %v33_v13  ;;  %611 = vmatmul.mubr.msk.f32.gmra.mrb[6].mxu1 %vm61_vm1, %v33_v13  ;;  %v375_v13 = vld [vmem:[%s964_s3 + $0x8] sm:$0xff] }
  0x14   :  { %630 = vmatprep.mubr.msk.f32.mxu0 %vm758_vm2, %v755_v4 }
  0x88   :  { %v42_v14 = vpop.permute.xlu0 %41  ;;  %v52_v26 = vpop.permute.xlu1 %51 }
  0x8c   :  { %v47_v25 = vpop.permute.xlu0 %46  ;;  %v57_v52 = vpop.permute.xlu1 %56 }
  0xda   :  { %v145_v15 = vpop.f32.mrb[0].mxu0  ;;  %v301_v16 = vpop.f32.mrb[0].mxu1 }
  0xdb   :  { %v146_v17 = vadd.f32 %v145_v15, %v42_v14  ;;  %v302_v18 = vadd.f32 %v301_v16, %v42_v14  ;;  %v147_v19 = vpop.f32.mrb[1].mxu0  ;;  %v303_v20 = vpop.f32.mrb[1].mxu1  ;;  %v634_v15 = vpack.c.bf16 %v375_v13, %v374_v12  ;;  %v376_v16 = vld [vmem:[%s964_s3 + $0x10] sm:$0xff] }
  0xdc   :  { %v148_v21 = vadd.f32 %v147_v19, %v42_v14  ;;  %v304_v22 = vadd.f32 %v303_v20, %v42_v14  ;;  %v757_v14 = vmov 0.0|0.0   ;;  %v197_v19 = vlaneseq }
  0xdd   :  { %v168_v23 = vmax.f32 %v146_v17, 0.0  ;;  %v324_v24 = vmax.f32 %v302_v18, 0.0  ;;  %633 = vmatprep.subr.bf16.mxu0 %v757_v14  ;;  %v377_v17 = vld [vmem:[%s964_s3 + $0x18] sm:$0xff] }
  0xde   :  { %v169_v27 = vmax.f32 %v148_v21, 0.0  ;;  %v325_v28 = vmax.f32 %v304_v22, 0.0  ;;  %v151_v29 = vpop.f32.mrb[2].mxu0  ;;  %v307_v30 = vpop.f32.mrb[2].mxu1  ;;  %635 = vmatpush3.bf16.msra.mxu0 %v634_v15  ;;  %v637_v18 = vpack.c.bf16 %v377_v17, %v376_v16  ;;  %v198_v21 = vand.u32 127, %v197_v19 }
  0xdf   :  { %v152_v31 = vadd.f32 %v151_v29, %v47_v25  ;;  %v308_v32 = vadd.f32 %v307_v30, %v47_v25  ;;  %v153_v33 = vpop.f32.mrb[3].mxu0  ;;  %v309_v34 = vpop.f32.mrb[3].mxu1  ;;  %636 = vmatprep.subr.bf16.mxu0 %v757_v14 }
  0xe0   :  { %v154_v35 = vadd.f32 %v153_v33, %v47_v25  ;;  %v310_v36 = vadd.f32 %v309_v34, %v47_v25  ;;  %v176_v37 = vadd.f32 %v169_v27, %v168_v23  ;;  %v332_v38 = vadd.f32 %v325_v28, %v324_v24 }
  0xe1   :  { %v170_v39 = vmax.f32 %v152_v31, 0.0  ;;  %v326_v40 = vmax.f32 %v308_v32, 0.0  ;;  %v203_v22 = vadd.s32 4294967288, %v198_v21  ;;  %v210_v25 = vadd.s32 4294967280, %v198_v21 }
  0xe2   :  { %v171_v41 = vmax.f32 %v154_v35, 0.0  ;;  %v327_v42 = vmax.f32 %v310_v36, 0.0  ;;  %v157_v43 = vpop.f32.mrb[4].mxu0  ;;  %177 = vadd.xlane.f32.xlu0 %v176_v37  ;;  %v313_v44 = vpop.f32.mrb[4].mxu1  ;;  %638 = vmatpush3.bf16.msra.mxu0 %v637_v18  ;;  %v217_v29 = vadd.s32 4294967272, %v198_v21 }
  0xe3   :  { %v159_v45 = vpop.f32.mrb[5].mxu0  ;;  %v314_v46 = vadd.f32 %v313_v44, %v52_v26  ;;  %v315_v47 = vpop.f32.mrb[5].mxu1  ;;  %v158_v48 = vadd.f32 %v157_v43, %v52_v26 }
  0xe4   :  { %v160_v49 = vadd.f32 %v159_v45, %v52_v26  ;;  %v316_v50 = vadd.f32 %v315_v47, %v52_v26  ;;  %v179_v51 = vadd.f32 %v171_v41, %v170_v39  ;;  %v335_v53 = vadd.f32 %v327_v42, %v326_v40 }
  0xe5   :  { %v328_v54 = vmax.f32 %v314_v46, 0.0  ;;  %v172_v55 = vmax.f32 %v158_v48, 0.0  ;;  %v200_v26 = vshrl.u32 %v197_v19, 7 }
  0xe6   :  { %v173_v56 = vmax.f32 %v160_v49, 0.0  ;;  %v329_v57 = vmax.f32 %v316_v50, 0.0  ;;  %v163_v58 = vpop.f32.mrb[6].mxu0  ;;  %v319_v59 = vpop.f32.mrb[6].mxu1  ;;  %180 = vadd.xlane.f32.xlu1 %v179_v51  ;;  %333 = vadd.xlane.f32.xlu0 %v332_v38 }
  0xe7   :  { %v165_v60 = vpop.f32.mrb[7].mxu0  ;;  %v321_v61 = vpop.f32.mrb[7].mxu1  ;;  %v164_v62 = vadd.f32 %v163_v58, %v57_v52  ;;  %v320_v63 = vadd.f32 %v319_v59, %v57_v52  ;;  %v206_v27 = vsub.s32 %v203_v22, %v200_v26  ;;  %v213_v30 = vsub.s32 %v210_v25, %v200_v26 }
  0xe8   :  { %v166_v0 = vadd.f32 %v165_v60, %v57_v52  ;;  %v322_v1 = vadd.f32 %v321_v61, %v57_v52  ;;  %v182_v2 = vadd.f32 %v173_v56, %v172_v55  ;;  %v338_v3 = vadd.f32 %v329_v57, %v328_v54  ;;  %v612_v60 = vld [vmem:[%s965_s4] ss:$0 sm:$0xff]  ;;  %s759_s4 = smov [#allocation3]  }
  0xe9   :  { %v174_v5 = vmax.f32 %v164_v62, 0.0  ;;  %v330_v6 = vmax.f32 %v320_v63, 0.0  ;;  %v201_v33 = vsub.s32 %v198_v21, %v200_v26  ;;  %v220_v38 = vsub.s32 %v217_v29, %v200_v26  ;;  %s550_s0 = sshll.u32 %s759_s4, 4  ;;  %s551_s0 = int_to_ptr.vmem [resolvable:$true] %s550_s0 }
  0xea   :  { %v175_v7 = vmax.f32 %v166_v0, 0.0  ;;  %v331_v8 = vmax.f32 %v322_v1, 0.0  ;;  %183 = vadd.xlane.f32.xlu1 %v182_v2  ;;  %336 = vadd.xlane.f32.xlu0 %v335_v53  ;;  %s661_s15 = scalar_lea.vmem %s551_s0, 32  ;;  %p666_p1 = scmp.lt.s32.totalorder %s551_s0, %s551_s0 }
  0xeb   :  { %p662_p0 = scmp.ne.s32.totalorder %s551_s0, %s661_s15  ;;  %p667_p2 = scmp.lt.s32.totalorder %s661_s15, %s661_s15 }
  0xec   :  { %v185_v9 = vadd.f32 %v175_v7, %v174_v5  ;;  %v341_v10 = vadd.f32 %v331_v8, %v330_v6 }
  0xed   :  { %p668_p3 = por %p667_p2, %p666_p1 }
  0xee   :  { %186 = vadd.xlane.f32.xlu1 %v185_v9  ;;  %339 = vadd.xlane.f32.xlu0 %v338_v3 }
  0xef   :  { %p669_p4 = pnand %p668_p3, %p662_p0 }
  0xf2   :  { %342 = vadd.xlane.f32.xlu0 %v341_v10 }
  0xff   :  { %475 = vperm.xlu1 %654, %v461_v11  }
 0x16f   :  { %v178_v20 = vpop.xlane.xlu0 %177 }
 0x170   :  { %v189_v34 = vmul.f32 0.00390625, %v178_v20 }
 0x172   :  { %v202_v42 = vrot.slane %v189_v34, %v201_v33 }
 0x173   :  { %v181_v23 = vpop.xlane.xlu1 %180  ;;  %v334_v24 = vpop.xlane.xlu0 %333 }
 0x174   :  { %v190_v28 = vmul.f32 0.00390625, %v181_v23  ;;  %v344_v43 = vmul.f32 0.00390625, %v334_v24 }
 0x176   :  { %v207_v36 = vrot.slane %v190_v28, %v206_v27  ;;  %v355_v52 = vrot.slane %v344_v43, %v201_v33 }
 0x177   :  { %v184_v31 = vpop.xlane.xlu1 %183  ;;  %v337_v32 = vpop.xlane.xlu0 %336 }
 0x178   :  { %v191_v35 = vmul.f32 0.00390625, %v184_v31  ;;  %v345_v37 = vmul.f32 0.00390625, %v337_v32  ;;  %v209_v46 = vsel %vm208_vm3, %v207_v36, %v202_v42 }
 0x17a   :  { %v214_v39 = vrot.slane %v191_v35, %v213_v30  ;;  %v359_v47 = vrot.slane %v345_v37, %v206_v27 }
 0x17b   :  { %v187_v40 = vpop.xlane.xlu1 %186  ;;  %v340_v41 = vpop.xlane.xlu0 %339 }
 0x17c   :  { %v192_v44 = vmul.f32 0.00390625, %v187_v40  ;;  %v346_v45 = vmul.f32 0.00390625, %v340_v41  ;;  %v216_v49 = vsel %vm215_vm4, %v214_v39, %v209_v46  ;;  %v360_v55 = vsel %vm208_vm3, %v359_v47, %v355_v52 }
 0x17e   :  { %v221_v48 = vrot.slane %v192_v44, %v220_v38  ;;  %v364_v50 = vrot.slane %v346_v45, %v213_v30 }
 0x17f   :  { %v343_v51 = vpop.xlane.xlu0 %342  ;;  %v476_v61 = vpop.permute.xlu1 %475 }
 0x180   :  { %v223_v53 = vsel %vm222_vm5, %v221_v48, %v216_v49  ;;  %v347_v54 = vmul.f32 0.00390625, %v343_v51  ;;  %v365_v57 = vsel %vm215_vm4, %v364_v50, %v360_v55  ;;  %vm477_vm9 = vcmp.eq.s32.totalorder %v198_v21, %v476_v61 }
 0x181   :  { %226 = vst.msk [vmem:[#allocation2] sm:$0x1] %vm225_vm6, %v223_v53 }
 0x182   :  { %v369_v56 = vrot.slane %v347_v54, %v220_v38 }
 0x184   :  { %v370_v58 = vsel %vm222_vm5, %v369_v56, %v365_v57 }
 0x185   :  { %372 = vst.msk [vmem:[#allocation2 + $0x1] sm:$0x1] %vm225_vm6, %v370_v58 }
 0x18c   :  { %v373_v59 = vld [vmem:[#allocation2] sm:$0x3] }
 0x18d   :  { %631 = vmatmul.mubr.msk.f32.vlgmr.msra.gmra.mrb[8].mxu0 %vm385_vm7, %v373_v59 }
 0x260   :  { %v455_v62 = vpop.f32.mrb[8].mxu0 }
 0x261   :  { %v456_v63 = vadd.f32 %v612_v60, %v455_v62  ;;  %v632_v0 = vpop.f32.mrb[9].mxu0 }
 0x263   :  { %v462_v1 = vsel %vm459_vm8, %v456_v63, -inf  ;;  %460 = vst.msk [vmem:[#allocation3] sm:$0x3] %vm459_vm8, %v456_v63  ;;  %v478_v2 = vsel %vm477_vm9, %v456_v63, 0.0 }
 0x264   :  { %463 = vmax.xlane.f32.xlu0 %v462_v1  ;;  %v479_v3 = vsel %vm459_vm8, %v478_v2, 0.0 }
 0x268   :  { %480 = vadd.xlane.f32.xlu0 %v479_v3 }
 0x2f1   :  { %v464_v5 = vpop.xlane.xlu0 %463 }
 0x2f2   :  { %v465_v6 = vsub.f32 %v456_v63, %v464_v5 }
 0x2f4   :  { %v466_v7 = vmul.f32 1.442695, %v465_v6 }
 0x2f5   :  { %v481_v8 = vpop.xlane.xlu0 %480 }
 0x2f6   :  { %657 = vpow2.f32 %v466_v7  ;;  %vm497_vm10 = vcmp.gt.f32.partialorder %v456_v63, %v481_v8 }
 0x2f7   :  { %v614_v11 = vsel %vm497_vm10, 1.0, %v755_v4 }
 0x2f8   :  { %v500_v12 = vsel %vm459_vm8, %v614_v11, 0.0 }
 0x300   :  { %v658_v9 = vpop.eup %657 }
 0x301   :  { %v468_v10 = vsel %vm459_vm8, %v658_v9, 0.0 }
 0x302   :  { %469 = vadd.xlane.f32.xlu0 %v468_v10 }
 0x306   :  { %501 = vadd.xlane.f32.xlu0 %v500_v12 }
 0x38f   :  { %v470_v13 = vpop.xlane.xlu0 %469 }
 0x390   :  { %659 = vlog2.f32 %v470_v13 }
 0x393   :  { %v502_v14 = vpop.xlane.xlu0 %501 }
 0x394   :  { %vm503_vm12 = vcmp.lt.f32.partialorder %v502_v14, 1.0  ;;  %vm520_vm13 = vcmp.lt.f32.partialorder %v502_v14, 5.0 }
 0x395   :  { %v615_v15 = vsel %vm503_vm12, 1.0, %v755_v4  ;;  %v616_v17 = vsel %vm520_vm13, 1.0, %v755_v4 }
 0x396   :  { %v506_v16 = vsel %vm483_vm11, %v615_v15, 0.0  ;;  %v523_v19 = vsel %vm483_vm11, %v616_v17, 0.0 }
 0x397   :  { %507 = vadd.xlane.f32.xlu0 %v506_v16 }
 0x39a   :  { %v660_v18 = vpop.eup %659 }
 0x39b   :  { %v472_v20 = vmul.f32 0.6931472, %v660_v18  ;;  %524 = vadd.xlane.f32.xlu0 %v523_v19 }
 0x39d   :  { %v473_v21 = vadd.f32 %v472_v20, %v464_v5 }
 0x39f   :  { %v482_v22 = vsub.f32 %v473_v21, %v481_v8 }
 0x3a1   :  { %v484_v23 = vsel %vm483_vm11, %v482_v22, 0.0 }
 0x3a2   :  { %485 = vadd.xlane.f32.xlu1 %v484_v23 }
 0x3a3   :  { %672 = shalt.err (!%p669_p4)
}
 0x3a4   :  { %s673_s18 = scalar_lea.hbm %s967_s6, 32 }
 0x3a5   :  { %p674_p5 = scmp.ne.s32.totalorder %s967_s6, %s673_s18  ;;  %p677_p6 = scmp.lt.u32.totalorder %s673_s18, %s967_s6 }
 0x3a7   :  { %p679_p7 = pnand %p677_p6, %p674_p5 }
 0x3a9   :  { %682 = shalt.err (!%p679_p7)
}
 0x3aa   :  { %553 = dma.vmem_to_hbm [thread:$0]  %s551_s0, 32, %s967_s6, [#allocation4]   ;;  %vm538_vm14 = vcmask 0  }
 0x3ab   :  { %s760_s6 = smov [#allocation5]   ;;  %s761_s2 = smov [#allocation7]  }
 0x3ac   :  { %s560_s25 = sshll.u32 %s760_s6, 4  ;;  %s570_s26 = sshll.u32 %s761_s2, 4  ;;  %s561_s25 = int_to_ptr.vmem [resolvable:$true] %s560_s25  ;;  %s907_s26 = int_to_ptr.vmem [resolvable:$true] %s570_s26 }
 0x3ad   :  { %s762_s27 = smov [#allocation8]   ;;  %s683_s3 = scalar_lea.vmem %s561_s25, 16 }
 0x3ae   :  { %s580_s28 = sshll.u32 %s762_s27, 4  ;;  %p684_p8 = scmp.ne.s32.totalorder %s561_s25, %s683_s3  ;;  %s909_s28 = int_to_ptr.vmem [resolvable:$true] %s580_s28 }
 0x3af   :  { %s687_s14 = scalar_lea.vmem %s561_s25, 32  ;;  %p688_p9 = scmp.lt.s32.totalorder %s561_s25, %s561_s25 }
 0x3b0   :  { %p689_p10 = scmp.lt.s32.totalorder %s687_s14, %s683_s3 }
 0x3b2   :  { %p690_p11 = por %p689_p10, %p688_p9 }
 0x3b4   :  { %p691_p12 = pnand %p690_p11, %p684_p8 }
 0x424   :  { %v508_v4 = vpop.xlane.xlu0 %507 }
 0x425   :  { %v509_v24 = vrot.slane %v508_v4, 4 }
 0x427   :  { %v510_v27 = vadd.f32 %v509_v24, %v508_v4 }
 0x428   :  { %v525_v25 = vpop.xlane.xlu0 %524 }
 0x429   :  { %v526_v26 = vrot.slane %v525_v25, 4  ;;  %v511_v29 = vrot.slane %v510_v27, 2 }
 0x42b   :  { %v527_v28 = vadd.f32 %v526_v26, %v525_v25  ;;  %v512_v34 = vadd.f32 %v511_v29, %v510_v27 }
 0x42d   :  { %v528_v31 = vrot.slane %v527_v28, 2  ;;  %v513_v38 = vrot.slane %v512_v34, 1 }
 0x42f   :  { %v486_v30 = vpop.xlane.xlu1 %485  ;;  %v529_v35 = vadd.f32 %v528_v31, %v527_v28  ;;  %v514_v42 = vadd.f32 %v513_v38, %v512_v34 }
 0x430   :  { %v487_v32 = vrot.slane %v486_v30, 4 }
 0x431   :  { %v530_v40 = vrot.slane %v529_v35, 1 }
 0x432   :  { %v488_v33 = vadd.f32 %v487_v32, %v486_v30 }
 0x433   :  { %v531_v43 = vadd.f32 %v530_v40, %v529_v35 }
 0x434   :  { %v489_v36 = vrot.slane %v488_v33, 2 }
 0x436   :  { %v490_v37 = vadd.f32 %v489_v36, %v488_v33 }
 0x438   :  { %v491_v39 = vrot.slane %v490_v37, 1 }
 0x43a   :  { %v492_v41 = vadd.f32 %v491_v39, %v490_v37 }
 0x43c   :  { %639 = vpush %v492_v41 }
 0x43d   :  { %641 = vpush %v514_v42 }
 0x43e   :  { %643 = vpush %v531_v43 }
 0x46d   :  { %s640_s1 = spop %639 }
 0x46e   :  { %s496_s29 = smul.f32 0.5, %s640_s1  ;;  %s642_s30 = spop %641 }
 0x46f   :  { %s518_s10 = smul.f32 0.5, %s642_s30  ;;  %s644_s11 = spop %643 }
 0x470   :  { %v537_v44 = vstv %s496_s29  ;;  %s535_s12 = smul.f32 0.5, %s644_s11 }
 0x471   :  { %s519_s13 = smul.f32 100.0, %s518_s10  ;;  %539 = vst.msk [vmem:[#allocation5] sm:$0x1] %vm538_vm14, %v537_v44 }
 0x472   :  { %s536_s5 = smul.f32 100.0, %s535_s12 }
 0x473   :  { %v540_v45 = vstv %s519_s13 }
 0x474   :  { %694 = shalt.err (!%p691_p12)
}
 0x475   :  { %s695_s15 = scalar_lea.hbm %s968_s7, 16 }
 0x476   :  { %p696_p13 = scmp.ne.s32.totalorder %s968_s7, %s695_s15  ;;  %p699_p0 = scmp.lt.u32.totalorder %s695_s15, %s968_s7 }
 0x478   :  { %p701_p1 = pnand %p699_p0, %p696_p13 }
 0x47a   :  { %704 = shalt.err (!%p701_p1)
}
 0x47b   :  { %563 = dma.vmem_to_hbm [thread:$0]  %s561_s25, 16, %s968_s7, [#allocation6]   ;;  %v542_v46 = vstv %s536_s5  ;;  %541 = vst.msk [vmem:[#allocation7] sm:$0x1] %vm538_vm14, %v540_v45 }
 0x47c   :  { %543 = vst.msk [vmem:[#allocation8] sm:$0x1] %vm538_vm14, %v542_v46  ;;  %s705_s22 = scalar_lea.vmem %s907_s26, 16  ;;  %s709_s23 = scalar_lea.vmem %s907_s26, 32 }
 0x47d   :  { %p706_p2 = scmp.ne.s32.totalorder %s907_s26, %s705_s22  ;;  %p710_p3 = scmp.lt.s32.totalorder %s907_s26, %s907_s26 }
 0x47e   :  { %p711_p4 = scmp.lt.s32.totalorder %s709_s23, %s705_s22 }
 0x480   :  { %p712_p5 = por %p711_p4, %p710_p3 }
 0x482   :  { %p713_p6 = pnand %p712_p5, %p706_p2 }
 0x484   :  { %716 = shalt.err (!%p713_p6)
}
 0x485   :  { %s717_s2 = scalar_lea.hbm %s969_s8, 16 }
 0x486   :  { %p718_p7 = scmp.ne.s32.totalorder %s969_s8, %s717_s2  ;;  %p721_p8 = scmp.lt.u32.totalorder %s717_s2, %s969_s8 }
 0x488   :  { %p723_p9 = pnand %p721_p8, %p718_p7 }
 0x48a   :  { %726 = shalt.err (!%p723_p9)
}
 0x48b   :  { %573 = dma.vmem_to_hbm [thread:$0]  %s907_s26, 16, %s969_s8, [#allocation6]  }
 0x48c   :  { %s727_s10 = scalar_lea.vmem %s909_s28, 16  ;;  %s731_s11 = scalar_lea.vmem %s909_s28, 32 }
 0x48d   :  { %p728_p10 = scmp.ne.s32.totalorder %s909_s28, %s727_s10  ;;  %p732_p11 = scmp.lt.s32.totalorder %s909_s28, %s909_s28 }
 0x48e   :  { %p733_p12 = scmp.lt.s32.totalorder %s731_s11, %s727_s10 }
 0x490   :  { %p734_p13 = por %p733_p12, %p732_p11 }
 0x492   :  { %p735_p0 = pnand %p734_p13, %p728_p10 }
 0x494   :  { %738 = shalt.err (!%p735_p0)
}
 0x495   :  { %s739_s5 = scalar_lea.hbm %s970_s9, 16 }
 0x496   :  { %p740_p1 = scmp.ne.s32.totalorder %s970_s9, %s739_s5  ;;  %p743_p2 = scmp.lt.u32.totalorder %s739_s5, %s970_s9 }
 0x498   :  { %p745_p3 = pnand %p743_p2, %p740_p1 }
 0x49a   :  { %748 = shalt.err (!%p745_p3)
}
 0x49b   :  { %583 = dma.vmem_to_hbm [thread:$0]  %s909_s28, 16, %s970_s9, [#allocation9]  }
 0x49c   :  { %749 = dma.done.wait [#allocation4], 32  }
 0x49d   :  { %750 = vsyncadd [#allocation4], 4294967264 }
 0x49e   :  { %751 = dma.done.wait [#allocation6], 32  }
 0x49f   :  { %752 = vsyncadd [#allocation6], 4294967264 }
 0x4a0   :  { %753 = dma.done.wait [#allocation9], 16  }
 0x4a1   :  { %754 = vsyncadd [#allocation9], 4294967280 }
 0x4a2   :  { %596 = vsyncpa [#allocation4], 1 }
 0x4a3   :  { %597 = vsyncpa [#allocation6], 1 }
 0x4a4   :  { %598 = vsyncpa [#allocation9], 1 }

</bundles_post_ra>
